<compile_context>
chip_gen: v7x
topology: tpu7x:2x2x1
jax: 0.10.0
libtpu: 0.0.40
codegen_flags: <defaults>
</compile_context>

<pallas_src>
import jax
import jax.numpy as jnp
from jax.experimental import pallas as pl
from jax.experimental.pallas import tpu as pltpu


def _round_up(v: int, m: int) -> int:
    return -(-v // m) * m


def _make_matvec_kernel(TM: int, M: int, num_k: int):
    """Kernel factory closing over static tiling facts.

    x_ref: (1, Mp)   full input vector, VMEM-resident (constant index map)
    w_ref: (TN, TM)  streamed weight tile (the moving MXU operand)
    o_ref: (TN, 1)   f32 output block, resident across the k (reduction) axis
    """
    mask_tail = (num_k * TM) > M  # last reduction block is partial

    def kernel(x_ref, w_ref, o_ref):
        k = pl.program_id(1)

        @pl.when(k == 0)
        def _init():
            o_ref[...] = jnp.zeros_like(o_ref)

        if num_k == 1:
            x_blk = x_ref[...]                       # (1, TM) == full x
        else:
            start = pl.multiple_of(k * TM, 128)      # TM is 128-aligned here
            x_blk = x_ref[:, pl.ds(start, TM)]       # (1, TM)

        def accum(w_tile):
            # (TN, TM) . (1, TM)^T -> (TN, 1); RHS (x) is the tiny stationary
            # MXU operand, the weight streams -> DMA stays the bottleneck.
            o_ref[...] += jax.lax.dot_general(
                w_tile,
                x_blk,
                dimension_numbers=(((1,), (1,)), ((), ())),
                preferred_element_type=jnp.float32,
            )

        if not mask_tail:
            accum(w_ref[...])
        else:
            @pl.when(k < num_k - 1)
            def _full():
                accum(w_ref[...])

            @pl.when(k == num_k - 1)
            def _tail():
                # Zero the K-tail columns: Pallas does not guarantee that the
                # out-of-bounds part of a partial block is zero-filled.
                w = w_ref[...]
                col = jax.lax.broadcasted_iota(jnp.int32, w.shape, 1)
                valid = M - (num_k - 1) * TM
                accum(jnp.where(col < valid, w, jnp.zeros_like(w)))

    return kernel


def matvec(weight: jax.Array, x: jax.Array, *, tn: int = 1024, tm: int = 1024):
    """y = weight @ x.  weight: (N, M), x: (M,) -> (N,) float32."""
    N, M = weight.shape
    assert x.shape == (M,)

    w = weight                                   # stream native dtype (no HBM copy)
    xv = x if x.dtype == w.dtype else x.astype(w.dtype)
    itemsize = jnp.dtype(w.dtype).itemsize

    # Row tile: 8-aligned; keep >= 2 row tiles when possible so the "parallel"
    # row axis shards across both TensorCores on v7x (harmless on v5e/v6e).
    if N <= 8:
        TN = N
    else:
        TN = min(tn, _round_up(-(-N // 2), 8))

    # Reduction tile: full M when small; otherwise 128-aligned and grown toward
    # a ~4 MiB weight block (8 MiB double-buffered fits every generation's
    # scoped-VMEM default, including v5e's 16 MiB).
    if M <= tm:
        TM = M
    else:
        target_cols = ((4 << 20) // max(TN * itemsize, 1)) // 128 * 128
        TM = max(tm, target_cols)
        TM = min(TM, (M // 128) * 128)

    num_i = -(-N // TN)
    num_k = -(-M // TM)
    Mp = num_k * TM

    # Pad only the input vector (cheap: M elements).  The weight is NOT padded:
    # its K-tail is masked inside the kernel, its N-tail rows are discarded by
    # Pallas when the partial output block is written back.
    if Mp != M:
        xv = jnp.pad(xv, ((0, Mp - M),))
    x_row = xv.reshape(1, Mp)

    kernel = _make_matvec_kernel(TM, M, num_k)

    y_col = pl.pallas_call(
        kernel,
        out_shape=jax.ShapeDtypeStruct((N, 1), jnp.float32),
        grid=(num_i, num_k),
        in_specs=[
            pl.BlockSpec((1, Mp), lambda i, k: (0, 0)),     # x: resident, 1 DMA total
            pl.BlockSpec((TN, TM), lambda i, k: (i, k)),    # weight: streamed tiles
        ],
        out_specs=pl.BlockSpec((TN, 1), lambda i, k: (i, 0)),
        compiler_params=pltpu.CompilerParams(
            dimension_semantics=("parallel", "arbitrary"),
        ),
        cost_estimate=pl.CostEstimate(
            flops=2 * N * M,
            transcendentals=0,
            bytes_accessed=N * M * itemsize + Mp * itemsize + N * 4,
        ),
    )(x_row, w)
    return y_col[:, 0]


# TODO(synk): @torch.jit.export foo(a) = a + 4 is a scripted scalar helper, not
# part of forward; no kernel needed (trivial scalar add).


if __name__ == "__main__":
    # Shapes consistent with the traced module: weight = ones(N, M), input (M,)
    N, M = 32, 128
    weight = jnp.ones((N, M), dtype=jnp.float32)
    x = jax.random.normal(jax.random.PRNGKey(0), (M,), dtype=jnp.float32)

    y = matvec(weight, x)
    jax.block_until_ready(y)
    y_ref = weight @ x
    assert y.shape == (N,)
    assert jnp.allclose(y, y_ref, atol=1e-5, rtol=1e-5)

    # Exercise row tiling, the partial reduction tail (in-kernel K mask) and a
    # partial last row block -- with no weight padding anywhere.
    N2, M2 = 600, 1300
    k1, k2 = jax.random.split(jax.random.PRNGKey(1))
    w2 = jax.random.normal(k1, (N2, M2), dtype=jnp.float32)
    x2 = jax.random.normal(k2, (M2,), dtype=jnp.float32)
    y2 = matvec(w2, x2)
    jax.block_until_ready(y2)
    y2_ref = w2 @ x2
    assert y2.shape == (N2,)
    assert jnp.allclose(y2, y2_ref, atol=1e-2, rtol=1e-2)

    print("KERNEL_OK")
</pallas_src>

<mosaic_0001>
module attributes {stable_mosaic.version = 11 : i64} {
  func.func @kernel(%arg0: i32, %arg1: i32, %arg2: memref<1x128xf32, #tpu.memory_space<vmem>>, %arg3: memref<16x128xf32, #tpu.memory_space<vmem>>, %arg4: memref<16x1xf32, #tpu.memory_space<vmem>>) attributes {dimension_semantics = [#tpu.dimension_semantics<parallel>, #tpu.dimension_semantics<arbitrary>], iteration_bounds = array<i64: 2, 1>, scalar_prefetch = 0 : i64, scratch_operands = 0 : i64, tpu.core_type = #tpu.core_type<tc>, window_params = [{pipeline_mode = #tpu.pipeline_mode<synchronous>, transform_indices = @transform_0, window_bounds = array<i64: 1, 128>}, {transform_indices = @transform_1, window_bounds = array<i64: 16, 128>}, {transform_indices = @transform_2, window_bounds = array<i64: 16, 1>}]} {
    %c0_i32 = arith.constant 0 : i32
    %0 = arith.cmpi eq, %arg1, %c0_i32 : i32
    %1 = arith.extui %0 : i1 to i32
    %c0_i32_0 = arith.constant 0 : i32
    %2 = arith.cmpi ne, %1, %c0_i32_0 : i32
    scf.if %2 {
      %cst_8 = arith.constant 0.000000e+00 : f32
      %9 = vector.broadcast %cst_8 : f32 to vector<16x1xf32>
      %c0_9 = arith.constant 0 : index
      %c0_10 = arith.constant 0 : index
      %10 = vector.load %arg4[%c0_9, %c0_10] : memref<16x1xf32, #tpu.memory_space<vmem>>, vector<16x1xf32>
      tpu.vector_store %arg4[%c0_9, %c0_10], %9 {strides = array<i32>} : memref<16x1xf32, #tpu.memory_space<vmem>>, vector<16x1xf32>,
    } else {
    }
    %c0 = arith.constant 0 : index
    %c0_1 = arith.constant 0 : index
    %3 = vector.load %arg2[%c0, %c0_1] : memref<1x128xf32, #tpu.memory_space<vmem>>, vector<1x128xf32>
    %c0_2 = arith.constant 0 : index
    %c0_3 = arith.constant 0 : index
    %4 = vector.load %arg3[%c0_2, %c0_3] : memref<16x128xf32, #tpu.memory_space<vmem>>, vector<16x128xf32>
    %c0_4 = arith.constant 0 : index
    %c0_5 = arith.constant 0 : index
    %5 = vector.load %arg4[%c0_4, %c0_5] : memref<16x1xf32, #tpu.memory_space<vmem>>, vector<16x1xf32>
    %cst = arith.constant dense<0.000000e+00> : vector<16x1xf32>
    %6 = tpu.matmul %4, %3, %cst {dimension_numbers = #tpu.dot_dimension_numbers<[1], [1], [0], [0], [0, 0, 1, 0], [], []>} : vector<16x128xf32>, vector<1x128xf32>, vector<16x1xf32> -> vector<16x1xf32>
    %7 = arith.addf %5, %6 : vector<16x1xf32>
    %c0_6 = arith.constant 0 : index
    %c0_7 = arith.constant 0 : index
    %8 = vector.load %arg4[%c0_6, %c0_7] : memref<16x1xf32, #tpu.memory_space<vmem>>, vector<16x1xf32>
    tpu.vector_store %arg4[%c0_6, %c0_7], %7 {strides = array<i32>} : memref<16x1xf32, #tpu.memory_space<vmem>>, vector<16x1xf32>,
    return
  }
  func.func @transform_0(%arg0: i32, %arg1: i32) -> (i32, i32) {
    %c0_i32 = arith.constant 0 : i32
    %c0_i32_0 = arith.constant 0 : i32
    %c0_i32_1 = arith.constant 0 : i32
    return %c0_i32, %c0_i32_0 : i32, i32
  }
  func.func @transform_1(%arg0: i32, %arg1: i32) -> (i32, i32) {
    %c0_i32 = arith.constant 0 : i32
    return %arg0, %arg1 : i32, i32
  }
  func.func @transform_2(%arg0: i32, %arg1: i32) -> (i32, i32) {
    %c0_i32 = arith.constant 0 : i32
    %c0_i32_0 = arith.constant 0 : i32
    return %arg0, %c0_i32 : i32, i32
  }
}

</mosaic_0001>

<bundles_post_ra>
// kernel: tpu_custom_call.1
= control target key start
LH: loop header
LB: loop body
LE: loop exit
PB: predicated region body
PF: predicated region fallthrough
CT: control target
= control target key end

     0   :  { %7 = vsyncpa [#allocation3], 0  ;;  %s706_s0 = inlined_call_operand.hbm [shape: f32[1,128], index: 0, kind: input, shape index: {}]   ;;  %s707_s1 = inlined_call_operand.hbm [shape: f32[32,128], index: 1, kind: input, shape index: {}]   ;;  %s708_s2 = inlined_call_operand.vmem [shape: f32[32,1], index: 2, kind: output, shape index: {}]  }
   0x1   :  { %8 = vsyncpa [#allocation5], 0 }
   0x2   :  { %10 = vsyncpa [#allocation5 + $0x1], 0  ;;  %s533_s9 = smov 0   ;;  %s535_s10 = smov 0  }
   0x3   :  { %s537_s11 = smov 0   ;;  %s539_s12 = smov 0  }
   0x4   :  { %s541_s13 = smov 0   ;;  %s543_s14 = smov 0  }
   0x5 LB: > { %s313_s15 = sadd.s32 4294967295, %s511_s14   ;;  %s58_s16 = sadd.s32 1, %s499_s11  ;;  %s511_s14 = sphi %s543_s14, %s16_s14   ;;  %s507_s13 = sphi %s541_s13, %s728_s13   ;;  %s503_s12 = sphi %s539_s12, %s727_s12   ;;  %s499_s11 = sphi %s537_s11, %s726_s11   ;;  %s495_s10 = sphi %s535_s10, %s725_s10   ;;  %s491_s9 = sphi %s533_s9, %s724_s9  }
   0x6   : > { %p65_p0 = scmp.ne.s32.totalorder %s499_s11, %s495_s10  ;;  %p66_p1 = scmp.eq.s32.totalorder %s511_s14, 0 }
   0x7   : > { %p71_p2 = scmp.ne.s32.totalorder %s495_s10, %s491_s9  ;;  %p567_p3 = scmp.eq.s32.totalorder %s313_s15, 0 }
   0x8   : > { %p67_p4 = por %p66_p1, %p65_p0  ;;  %p315_p5 = scmp.ge.s32.totalorder %s511_s14, 1 }
   0x9   : > { %s714_s17 = scalar_select %p567_p3, 1, 0 }
   0xa   : > { %p574_p6 = por %p567_p3, %p71_p2  ;;  %p108_p7 = scmp.lt.s32.totalorder %s511_s14, 3 }
   0xb   : > { %s513_s20 = smov [#allocation2]   ;;  %p345_p10 = scmp.lt.s32.totalorder %s511_s14, 2 }
   0xc   : > { %s715_s18 = scalar_select %p574_p6, 1, 0 }
   0xd   : > { %p579_p8 = pnand %p315_p5, %p108_p7  ;;  %s121_s21 = sshll.u32 %s513_s20, 4  ;;  %s122_s21 = int_to_ptr.vmem [resolvable:$true] %s121_s21 }
   0xe   : > { %s132_s22 = sand.u32 1, %s499_s11   ;;  %p593_p12 = pnand %p345_p10, %p67_p4 }
   0xf   : > { %s716_s19 = scalar_select %p579_p8, 1, 0 }
  0x10   : > { %p336_p9 = pneg %p579_p8  ;;  %s399_s27 = scalar_lea.hbm %s706_s0, 16 }
  0x11   : > { %s718_s24 = scalar_select %p593_p12, 1, 0 }
  0x12   : > { %p589_p11 = pnand %p336_p9, %p567_p3  ;;  %p400_p13 = scmp.ne.s32.totalorder %s706_s0, %s399_s27 }
  0x13   : > { %p406_p5 = scmp.lt.u32.totalorder %s399_s27, %s706_s0 }
  0x14   : > { %p401_p0 = pneg %p589_p11 }
  0x16   : > { %p402_p1 = pnand %p401_p0, %p400_p13 }
  0x18   : > { %p403_p2 = pneg %p402_p1 }
  0x1a   : > { %p408_p4 = pnand %p406_p5, %p403_p2 }
  0x1c   : > { %411 = shalt.err (!%p408_p4)
}
  0x1d   : > { %s412_s4 = scalar_lea.vmem %s122_s21, 16  ;;  %s419_s5 = scalar_lea.vmem %s122_s21, 32 }
  0x1e   : > { %p413_p7 = scmp.ne.s32.totalorder %s122_s21, %s412_s4  ;;  %p420_p6 = scmp.lt.s32.totalorder %s122_s21, %s122_s21 }
  0x1f   : > { %p421_p3 = scmp.lt.s32.totalorder %s419_s5, %s412_s4 }
  0x20   : > { %p415_p9 = pnand %p413_p7, %p401_p0 }
  0x21   : > { %p422_p8 = por %p421_p3, %p420_p6 }
  0x22   : > { %p416_p10 = pneg %p415_p9 }
  0x24   : > { %p423_p12 = pnand %p422_p8, %p416_p10 }
  0x26   : > { %426 = shalt.err (!%p423_p12)
}
  0x27   : > { %339 = dma.hbm_to_vmem [thread:$0]  (!%p589_p11), %s706_s0, 16, %s122_s21, [#allocation3]  }
  0x28   : > { %s28_s8 = sadd.s32 1, %s507_s13  ;;  %s318_s9 = sshll.u32 %s132_s22, 4 }
  0x29   : > { %p30_p13 = scmp.ge.s32.totalorder %s28_s8, 2  ;;  %s329_s15 = sshll.u32 %s507_s13, 8 }
  0x2a   : > { %s136_s20 = scalar_lea.vmem [#allocation4], %s318_s9  ;;  %s622_s27 = scalar_lea.hbm %s707_s1, %s329_s15 }
  0x2b   : > { %s144_s25 = sshll.u32 %s136_s20, 4  ;;  %s730_s8 = smov (%p30_p13, %s28_s8), 0  ;;  %s624_s25 = int_to_ptr.vmem [resolvable:$true] %s144_s25 }
  0x2c   : > { %s53_s21 = ssub.s32 %s507_s13, %s730_s8  ;;  %s634_s29 = scalar_lea.sflag [#allocation5], %s132_s22 }
  0x2d   : > { %p628_p3 = scmp.eq.s32.totalorder %s53_s21, 0  ;;  %s427_s30 = scalar_lea.hbm %s622_s27, 256 }
  0x2e   : > { %p428_p6 = scmp.ne.s32.totalorder %s622_s27, %s427_s30  ;;  %p720_p8 = scmp.ne.s32.totalorder %s718_s24, 0 }
  0x2f   : > { %s432_s5 = scalar_lea.hbm %s707_s1, 512  ;;  %p433_p1 = scmp.lt.u32.totalorder %s622_s27, %s707_s1 }
  0x30   : > { %p429_p11 = pneg %p720_p8  ;;  %p434_p2 = scmp.lt.u32.totalorder %s432_s5, %s427_s30 }
  0x31   : > { %p436_p4 = scmp.lt.u32.totalorder %s427_s30, %s622_s27 }
  0x32   : > { %p430_p12 = pnand %p429_p11, %p428_p6  ;;  %p435_p5 = por %p434_p2, %p433_p1 }
  0x34   : > { %p431_p0 = pneg %p430_p12  ;;  %p437_p7 = por %p436_p4, %p435_p5 }
  0x36   : > { %p438_p9 = pnand %p437_p7, %p431_p0 }
  0x38   : > { %441 = shalt.err (!%p438_p9)
}
  0x39   : > { %s442_s22 = scalar_lea.vmem %s624_s25, 256  ;;  %s514_s9 = smov [#allocation4]  }
  0x3a   : > { %p443_p10 = scmp.ne.s32.totalorder %s624_s25, %s442_s22  ;;  %s447_s15 = sshll.u32 %s514_s9, 4  ;;  %s448_s15 = int_to_ptr.vmem [resolvable:$false] %s447_s15 }
  0x3b   : > { %s449_s20 = scalar_lea.vmem %s448_s15, 512  ;;  %p450_p12 = scmp.lt.s32.totalorder %s624_s25, %s448_s15 }
  0x3c   : > { %p445_p13 = pnand %p443_p10, %p429_p11  ;;  %p451_p1 = scmp.lt.s32.totalorder %s449_s20, %s442_s22 }
  0x3e   : > { %p446_p6 = pneg %p445_p13  ;;  %p452_p2 = por %p451_p1, %p450_p12 }
  0x40   : > { %p453_p5 = pnand %p452_p2, %p446_p6 }
  0x42   : > { %456 = shalt.err (!%p453_p5)
}
  0x43   : > { %s515_s23 = smov 128   ;;  %s516_s26 = smov 8  }
  0x44   : > { %343 = dma.hbm_to_vmem [thread:$0]  (!%p720_p8), %s622_s27, 256, %s624_s25, %s634_s29, %s515_s23, %s515_s23, %s516_s26  }
  0x45   : > { %s667_s21 = scalar_select %p628_p3, %s499_s11, %s58_s16  }
  0x46   : > { %p721_p11 = scmp.ne.s32.totalorder %s716_s19, 0 }
  0x47   : > { %p722_p0 = scmp.ne.s32.totalorder (!%p721_p11), %s714_s17, 0 }
  0x48   : > { %156 = sbr.rel (%p721_p11) target bundleno = 236 (0xec), region = 28 }
  0x4f   : > { %482 = dma.done.wait (%p722_p0), [#allocation3], 16  }
  0x50   : > { %484 = vsyncadd (%p722_p0), [#allocation3], 4294967280  ;;  %s162_s30 = sand.u32 1, %s495_s10   ;;  %p723_p8 = scmp.ne.s32.totalorder %s715_s18, 0 }
  0x51   : > { %s323_s3 = sshll.u32 %s162_s30, 4  ;;  %s163_s4 = scalar_lea.sflag [#allocation5], %s162_s30 }
  0x52   : > { %s166_s24 = scalar_lea.vmem [#allocation4], %s323_s3 }
  0x53   : > { %486 = dma.done.wait (%p723_p8), %s163_s4, 256  }
  0x54   : > { %488 = vsyncadd (%p723_p8), %s163_s4, 4294967040  ;;  %s324_s16 = sshll.u32 %s503_s12, 1  ;;  %vm198_vm0 = vcmask 7168   ;;  %v326_v0 = vld [vmem:[#allocation2] ss:$0 sm:$0xff]  ;;  %v202_v1 = vld [vmem:[%s166_s24] sm:$0xff] }
  0x55   : > { %p189_p3 = scmp.lt.s32.totalorder %s324_s16, 3  ;;  %v203_v2 = vld [vmem:[%s166_s24 + $0x8] sm:$0xff]  ;;  %v517_v3 = vmov 0.0   ;;  %v212_v4 = vmul.f32 %v326_v0, %v202_v1 }
  0x56   : > { %v213_v5 = vmul.f32 %v326_v0, %v203_v2 }
  0x57   : > { %s732_s16 = smov (!%p189_p3, %s324_s16), 3  ;;  %214 = vadd.xlane.f32.xlu0 %v212_v4 }
  0x58   : > { %s325_s19 = sshll.u32 %s732_s16, 3 }
  0x59   : > { %s192_s27 = scalar_lea.vmem %s708_s2, %s325_s19 }
  0x5a   : > { %199 = vst.msk [vmem:[%s192_s27] sm:$0xff] %vm198_vm0, %v517_v3  ;;  %200 = vst.msk [vmem:[%s192_s27 + $0x8] sm:$0xff] %vm198_vm0, %v517_v3 }
  0x5b   : > { %216 = vadd.xlane.f32.xlu0 %v213_v5 }
  0x61   : > { %v204_v6 = vld [vmem:[%s192_s27] sm:$0xff]  ;;  %v205_v8 = vld [vmem:[%s192_s27 + $0x8] sm:$0xff] }
  0xe4   : > { %v215_v7 = vpop.xlane.xlu0 %214 }
  0xe5   : > { %v218_v9 = vadd.f32 %v215_v7, %v204_v6 }
  0xe7   : > { %221 = vst.msk [vmem:[%s192_s27] sm:$0xff] %vm198_vm0, %v218_v9 }
  0xe8   : > { %v217_v10 = vpop.xlane.xlu0 %216 }
  0xe9   : > { %v219_v11 = vadd.f32 %v217_v10, %v205_v8 }
  0xeb   : > { %222 = vst.msk [vmem:[%s192_s27 + $0x8] sm:$0xff] %vm198_vm0, %v219_v11 }
  0xec PF: > { %s16_s14 = sadd.s32 1, %s511_s14   ;;  %s724_s9 = smov %s495_s10 }
  0xed   : > { %p13_p4 = scmp.ge.s32.totalorder %s16_s14, 4   ;;  %s725_s10 = smov %s499_s11 }
  0xee   : > { %s726_s11 = smov %s667_s21  ;;  %s727_s12 = smov %s507_s13 }
  0xef   : > { %s728_s13 = smov %s730_s8  ;;  %15 = sbr.rel (!%p13_p4) target bundleno = 5 (0x5), region = 77 }
  0xf6   :  { %245 = vsyncpa [#allocation3], 1 }
  0xf7   :  { %247 = vsyncpa [#allocation3 + $0x1], 1 }
  0xf8   :  { %248 = vsyncpa [#allocation5], 1 }
  0xf9   :  { %250 = vsyncpa [#allocation5 + $0x1], 1 }

</bundles_post_ra>
